<compile_context>
chip_gen: v7x
topology: tpu7x:2x2x1
jax: 0.10.0
libtpu: 0.0.40
codegen_flags: <defaults>
</compile_context>

<pallas_src>
import jax
import jax.numpy as jnp
from jax.experimental import pallas as pl
from jax.experimental.pallas import tpu as pltpu


def mlp_kernel(xT_ref, w1_ref, b1_ref, w2_ref, b2_ref, w3_ref, b3_ref, oT_ref):
    # xT: (Din, Bt) ; weights: (out, in) ; biases: (out, 1) ; oT: (Dout, Bt)
    xT = xT_ref[...]
    z = jnp.tanh(
        jnp.dot(w1_ref[...], xT, preferred_element_type=jnp.float32) + b1_ref[...]
    )
    z = jnp.tanh(
        jnp.dot(w2_ref[...], z, preferred_element_type=jnp.float32) + b2_ref[...]
    )
    oT_ref[...] = (
        jnp.dot(w3_ref[...], z, preferred_element_type=jnp.float32) + b3_ref[...]
    )


def net_forward(x, params, *, batch_tile=256):
    """x: (B, Din) float32.  Returns (B, Dout) float32."""
    w1, b1, w2, b2, w3, b3 = params  # torch layout: w (out, in), b (out, 1)
    B, Din = x.shape
    Dout = w3.shape[0]

    # Pad batch up to a multiple of batch_tile and move batch to the lane axis.
    Bp = ((B + batch_tile - 1) // batch_tile) * batch_tile
    xT = jnp.zeros((Din, Bp), jnp.float32).at[:, :B].set(x.T)

    grid = (Bp // batch_tile,)

    # Tiny weights/biases: resident in VMEM, no tiling / per-step bookkeeping.
    def resident():
        return pl.BlockSpec(memory_space=pltpu.MemorySpace.VMEM)

    outT = pl.pallas_call(
        mlp_kernel,
        out_shape=jax.ShapeDtypeStruct((Dout, Bp), jnp.float32),
        grid_spec=pltpu.PrefetchScalarGridSpec(
            num_scalar_prefetch=0,
            grid=grid,
            in_specs=[
                pl.BlockSpec((Din, batch_tile), lambda i: (0, i)),  # x tile
                resident(),  # w1 (10, 4)
                resident(),  # b1 (10, 1)
                resident(),  # w2 (10, 10)
                resident(),  # b2 (10, 1)
                resident(),  # w3 (1, 10)
                resident(),  # b3 (1, 1)
            ],
            out_specs=pl.BlockSpec((Dout, batch_tile), lambda i: (0, i)),
        ),
        compiler_params=pltpu.CompilerParams(
            dimension_semantics=("parallel",)  # shards grid steps across TCs on v7x
        ),
    )(xT, w1, b1, w2, b2, w3, b3)

    return outT[:, :B].T


def xavier_uniform(key, fan_in, fan_out):
    # Matches torch.nn.init.xavier_uniform_ (gain=1): U(-a, a), a = sqrt(6/(fan_in+fan_out))
    a = jnp.sqrt(6.0 / (fan_in + fan_out))
    # Torch stores Linear weight as (out, in); the transposed-layout kernel uses
    # exactly that shape (W @ xT), so no transpose is needed.
    return jax.random.uniform(key, (fan_out, fan_in), jnp.float32, -a, a)


def init_params(key):
    k1, k2, k3 = jax.random.split(key, 3)
    w1 = xavier_uniform(k1, 4, 10)
    b1 = jnp.zeros((10, 1), jnp.float32)
    w2 = xavier_uniform(k2, 10, 10)
    b2 = jnp.zeros((10, 1), jnp.float32)
    w3 = xavier_uniform(k3, 10, 1)
    b3 = jnp.zeros((1, 1), jnp.float32)
    return (w1, b1, w2, b2, w3, b3)


def net_forward_ref(x, params):
    w1, b1, w2, b2, w3, b3 = params
    z = jnp.tanh(x @ w1.T + b1[:, 0])
    z = jnp.tanh(z @ w2.T + b2[:, 0])
    return z @ w3.T + b3[:, 0]


if __name__ == "__main__":
    key = jax.random.PRNGKey(0)
    pkey, xkey = jax.random.split(key)
    params = init_params(pkey)

    # Non-multiple-of-tile batch to exercise the padding path; with
    # batch_tile=256 this gives a 2-step grid (keeps both v7x TCs busy).
    B = 300
    x = jax.random.normal(xkey, (B, 4), jnp.float32)

    out = net_forward(x, params)
    out = jax.block_until_ready(out)

    ref = net_forward_ref(x, params)
    assert out.shape == (B, 1)
    assert jnp.allclose(out, ref, atol=1e-5, rtol=1e-5), "mismatch vs reference"

    print("KERNEL_OK")
</pallas_src>

<mosaic_0001>
module attributes {stable_mosaic.version = 11 : i64} {
  func.func @mlp_kernel(%arg0: i32, %arg1: memref<4x256xf32, #tpu.memory_space<vmem>>, %arg2: memref<10x4xf32, #tpu.memory_space<vmem>>, %arg3: memref<10x1xf32, #tpu.memory_space<vmem>>, %arg4: memref<10x10xf32, #tpu.memory_space<vmem>>, %arg5: memref<10x1xf32, #tpu.memory_space<vmem>>, %arg6: memref<1x10xf32, #tpu.memory_space<vmem>>, %arg7: memref<1x1xf32, #tpu.memory_space<vmem>>, %arg8: memref<1x256xf32, #tpu.memory_space<vmem>>) attributes {dimension_semantics = [#tpu.dimension_semantics<parallel>], iteration_bounds = array<i64: 2>, scalar_prefetch = 0 : i64, scratch_operands = 0 : i64, tpu.core_type = #tpu.core_type<tc>, window_params = [{transform_indices = @transform_0, window_bounds = array<i64: 4, 256>}, {pipeline_mode = #tpu.pipeline_mode<synchronous>, transform_indices = @transform_1, window_bounds = array<i64: 10, 4>}, {pipeline_mode = #tpu.pipeline_mode<synchronous>, transform_indices = @transform_2, window_bounds = array<i64: 10, 1>}, {pipeline_mode = #tpu.pipeline_mode<synchronous>, transform_indices = @transform_3, window_bounds = array<i64: 10, 10>}, {pipeline_mode = #tpu.pipeline_mode<synchronous>, transform_indices = @transform_4, window_bounds = array<i64: 10, 1>}, {pipeline_mode = #tpu.pipeline_mode<synchronous>, transform_indices = @transform_5, window_bounds = array<i64: 1, 10>}, {pipeline_mode = #tpu.pipeline_mode<synchronous>, transform_indices = @transform_6, window_bounds = array<i64: 1, 1>}, {transform_indices = @transform_7, window_bounds = array<i64: 1, 256>}]} {
    %c0 = arith.constant 0 : index
    %c0_0 = arith.constant 0 : index
    %0 = vector.load %arg1[%c0, %c0_0] : memref<4x256xf32, #tpu.memory_space<vmem>>, vector<4x256xf32>
    %c0_1 = arith.constant 0 : index
    %c0_2 = arith.constant 0 : index
    %1 = vector.load %arg2[%c0_1, %c0_2] : memref<10x4xf32, #tpu.memory_space<vmem>>, vector<10x4xf32>
    %cst = arith.constant dense<0.000000e+00> : vector<10x256xf32>
    %2 = tpu.matmul %1, %0, %cst {dimension_numbers = #tpu.dot_dimension_numbers<[1], [0], [0], [1], [0, 0, 1, 1], [], []>} : vector<10x4xf32>, vector<4x256xf32>, vector<10x256xf32> -> vector<10x256xf32>
    %c0_3 = arith.constant 0 : index
    %c0_4 = arith.constant 0 : index
    %3 = vector.load %arg3[%c0_3, %c0_4] : memref<10x1xf32, #tpu.memory_space<vmem>>, vector<10x1xf32>
    %4 = vector.broadcast %3 : vector<10x1xf32> to vector<10x256xf32>
    %5 = arith.addf %2, %4 : vector<10x256xf32>
    %6 = math.tanh %5 : vector<10x256xf32>
    %c0_5 = arith.constant 0 : index
    %c0_6 = arith.constant 0 : index
    %7 = vector.load %arg4[%c0_5, %c0_6] : memref<10x10xf32, #tpu.memory_space<vmem>>, vector<10x10xf32>
    %cst_7 = arith.constant dense<0.000000e+00> : vector<10x256xf32>
    %8 = tpu.matmul %7, %6, %cst_7 {dimension_numbers = #tpu.dot_dimension_numbers<[1], [0], [0], [1], [0, 0, 1, 1], [], []>} : vector<10x10xf32>, vector<10x256xf32>, vector<10x256xf32> -> vector<10x256xf32>
    %c0_8 = arith.constant 0 : index
    %c0_9 = arith.constant 0 : index
    %9 = vector.load %arg5[%c0_8, %c0_9] : memref<10x1xf32, #tpu.memory_space<vmem>>, vector<10x1xf32>
    %10 = vector.broadcast %9 : vector<10x1xf32> to vector<10x256xf32>
    %11 = arith.addf %8, %10 : vector<10x256xf32>
    %12 = math.tanh %11 : vector<10x256xf32>
    %c0_10 = arith.constant 0 : index
    %c0_11 = arith.constant 0 : index
    %13 = vector.load %arg6[%c0_10, %c0_11] : memref<1x10xf32, #tpu.memory_space<vmem>>, vector<1x10xf32>
    %cst_12 = arith.constant dense<0.000000e+00> : vector<1x256xf32>
    %14 = tpu.matmul %13, %12, %cst_12 {dimension_numbers = #tpu.dot_dimension_numbers<[1], [0], [0], [1], [0, 0, 1, 1], [], []>} : vector<1x10xf32>, vector<10x256xf32>, vector<1x256xf32> -> vector<1x256xf32>
    %c0_13 = arith.constant 0 : index
    %c0_14 = arith.constant 0 : index
    %15 = vector.load %arg7[%c0_13, %c0_14] : memref<1x1xf32, #tpu.memory_space<vmem>>, vector<1x1xf32>
    %16 = vector.broadcast %15 : vector<1x1xf32> to vector<1x256xf32>
    %17 = arith.addf %14, %16 : vector<1x256xf32>
    %c0_15 = arith.constant 0 : index
    %c0_16 = arith.constant 0 : index
    %18 = vector.load %arg8[%c0_15, %c0_16] : memref<1x256xf32, #tpu.memory_space<vmem>>, vector<1x256xf32>
    tpu.vector_store %arg8[%c0_15, %c0_16], %17 {strides = array<i32>} : memref<1x256xf32, #tpu.memory_space<vmem>>, vector<1x256xf32>,
    return
  }
  func.func @transform_0(%arg0: i32) -> (i32, i32) {
    %c0_i32 = arith.constant 0 : i32
    %c0_i32_0 = arith.constant 0 : i32
    return %c0_i32, %arg0 : i32, i32
  }
  func.func @transform_1(%arg0: i32) -> (i32, i32) {
    %c0_i32 = arith.constant 0 : i32
    %c0_i32_0 = arith.constant 0 : i32
    %c0_i32_1 = arith.constant 0 : i32
    return %c0_i32, %c0_i32_0 : i32, i32
  }
  func.func @transform_2(%arg0: i32) -> (i32, i32) {
    %c0_i32 = arith.constant 0 : i32
    %c0_i32_0 = arith.constant 0 : i32
    %c0_i32_1 = arith.constant 0 : i32
    return %c0_i32, %c0_i32_0 : i32, i32
  }
  func.func @transform_3(%arg0: i32) -> (i32, i32) {
    %c0_i32 = arith.constant 0 : i32
    %c0_i32_0 = arith.constant 0 : i32
    %c0_i32_1 = arith.constant 0 : i32
    return %c0_i32, %c0_i32_0 : i32, i32
  }
  func.func @transform_4(%arg0: i32) -> (i32, i32) {
    %c0_i32 = arith.constant 0 : i32
    %c0_i32_0 = arith.constant 0 : i32
    %c0_i32_1 = arith.constant 0 : i32
    return %c0_i32, %c0_i32_0 : i32, i32
  }
  func.func @transform_5(%arg0: i32) -> (i32, i32) {
    %c0_i32 = arith.constant 0 : i32
    %c0_i32_0 = arith.constant 0 : i32
    %c0_i32_1 = arith.constant 0 : i32
    return %c0_i32, %c0_i32_0 : i32, i32
  }
  func.func @transform_6(%arg0: i32) -> (i32, i32) {
    %c0_i32 = arith.constant 0 : i32
    %c0_i32_0 = arith.constant 0 : i32
    %c0_i32_1 = arith.constant 0 : i32
    return %c0_i32, %c0_i32_0 : i32, i32
  }
  func.func @transform_7(%arg0: i32) -> (i32, i32) {
    %c0_i32 = arith.constant 0 : i32
    %c0_i32_0 = arith.constant 0 : i32
    return %c0_i32, %arg0 : i32, i32
  }
}

</mosaic_0001>

<bundles_post_ra>
// kernel: tpu_custom_call.1
= control target key start
LH: loop header
LB: loop body
LE: loop exit
PB: predicated region body
PF: predicated region fallthrough
CT: control target
= control target key end

     0   :  { %s1040_s0 = inlined_call_operand.vmem [shape: f32[4,512], index: 0, kind: input, shape index: {}]   ;;  %s1041_s1 = inlined_call_operand.vmem [shape: f32[10,4], index: 1, kind: input, shape index: {}]   ;;  %s1042_s2 = inlined_call_operand.vmem [shape: f32[10,1], index: 2, kind: input, shape index: {}]   ;;  %s1043_s3 = inlined_call_operand.vmem [shape: f32[10,10], index: 3, kind: input, shape index: {}]   ;;  %s1044_s4 = inlined_call_operand.vmem [shape: f32[10,1], index: 4, kind: input, shape index: {}]   ;;  %s1045_s5 = inlined_call_operand.vmem [shape: f32[1,10], index: 5, kind: input, shape index: {}]   ;;  %s1046_s6 = inlined_call_operand.<no memory space> [shape: f32[1,1], index: 6, kind: input, shape index: {}]   ;;  %s1047_s7 = inlined_call_operand.hbm [shape: f32[1,512], index: 7, kind: output, shape index: {}]  }
   0x1   :  { %v12_v0 = vstv %s1046_s6 }
   0x2   :  { %13 = vst [vmem:[#allocation2] sm:$0x1] %v12_v0 }
   0x3   :  { %14 = vsyncpa [#allocation4], 0 }
   0x4   :  { %16 = vsyncpa [#allocation4 + $0x1], 0  ;;  %s899_s26 = smov 0   ;;  %s901_s27 = smov 0  }
   0x5   :  { %s903_s28 = smov 0   ;;  %s905_s29 = smov 0  }
   0x6 LB: > { %s920_s6 = sadd.s32 4294967295, %s849_s29   ;;  %s689_s30 = sadd.s32 4294967294, %s849_s29   ;;  %s849_s29 = sphi %s905_s29, %s1055_s29   ;;  %s845_s28 = sphi %s903_s28, %s1054_s28   ;;  %s841_s27 = sphi %s901_s27, %s1053_s27   ;;  %s837_s26 = sphi %s899_s26, %s1052_s26  }
   0x7   : > { %s924_s8 = sadd.s32 1, %s849_s29   ;;  %s181_s9 = sadd.s32 1, %s845_s28 }
   0x8   : > { %s178_s10 = ssub.s32 %s849_s29, %s924_s8  ;;  %p191_p0 = scmp.ne.s32.totalorder %s845_s28, %s841_s27 }
   0x9   : > { %p179_p1 = scmp.eq.s32.totalorder %s178_s10, 0  ;;  %p192_p2 = scmp.eq.s32.totalorder %s920_s6, 1 }
   0xa   : > { %p197_p3 = scmp.ne.s32.totalorder %s841_s27, %s837_s26  ;;  %p198_p4 = scmp.eq.s32.totalorder %s689_s30, 1 }
   0xb   : > { %s935_s11 = scalar_select %p179_p1, %s845_s28, %s181_s9  }
   0xc   : > { %p937_p5 = por %p192_p2, %p191_p0  ;;  %p941_p6 = por %p198_p4, %p197_p3 }
   0xd   : > { %p692_p7 = scmp.ge.s32.totalorder %s849_s29, 1  ;;  %p243_p8 = scmp.lt.s32.totalorder %s849_s29, 3 }
   0xf   : > { %p244_p9 = pnand %p692_p7, %p243_p8 }
  0x10   : > { %s694_s14 = sshll.u32 (!%p244_p9), %s920_s6, 1  ;;  %v851_v1 = vmov (!%p244_p9), 0.0   ;;  %v852_v2 = vmov (!%p244_p9), 0   ;;  %v285_v3 = vld [vmem:[%s1042_s2] sm:$0xff] (!%p244_p9)  ;;  %v286_v4 = vld [vmem:[%s1042_s2 + $0x8] sm:$0x3] (!%p244_p9)  ;;  %v508_v48 = vlaneseq (!%p244_p9) }
  0x11   : > { %247 = sbr.rel (%p244_p9) target bundleno = 739 (0x2e3), region = 48  ;;  %p276_p10 = scmp.lt.s32.totalorder (!%p244_p9), %s694_s14, 3  ;;  %375 = vmatprep.mubr.f32.mxu0 (!%p244_p9), %v851_v1  ;;  %768 = vset.pattern.permute.xlu0 (!%p244_p9), %v852_v2  ;;  %vm306_vm0 = vcmask (!%p244_p9), 1043456   ;;  %v502_v6 = vld [vmem:[#allocation2] sm:$0x1] (!%p244_p9)  ;;  %vm299_vm1 = vcmask (!%p244_p9), 31744  }
  0x12   : > { %289 = vperm.xlu0 (!%p244_p9), %768, %v285_v3   ;;  %484 = vmatprep.mubr.f32.mxu1 (!%p244_p9), %v851_v1  ;;  %v283_v8 = vld [vmem:[%s1041_s1] sm:$0xff] (!%p244_p9)  ;;  %v284_v9 = vld [vmem:[%s1041_s1 + $0x8] sm:$0x3] (!%p244_p9)  ;;  %vm413_vm2 = vcmask (!%p244_p9), 1041408   ;;  %vm853_vm3 = vmmov (!%p244_p9), 1   ;;  %vm406_vm5 = vcmask (!%p244_p9), 80896  }
  0x13   : > { %769 = vset.pattern.permute.xlu1 (!%p244_p9), %v852_v2  ;;  %v394_v10 = vld [vmem:[%s1044_s4] sm:$0xff] (!%p244_p9)  ;;  %v395_v11 = vld [vmem:[%s1044_s4 + $0x8] sm:$0x3] (!%p244_p9)  ;;  %vm969_vm4 = vmpackc.low (!%p244_p9), %vm413_vm2, %vm853_vm3  ;;  %v509_v49 = vshrl.u32 (!%p244_p9), %v508_v48, 7  ;;  %v854_v50 = vmov (!%p244_p9), 1966171168  }
  0x14   : > { %398 = vperm.xlu1 (!%p244_p9), %769, %v394_v10   ;;  %v392_v29 = vld [vmem:[%s1043_s3] sm:$0xff] (!%p244_p9)  ;;  %v393_v30 = vld [vmem:[%s1043_s3 + $0x8] sm:$0x3] (!%p244_p9)  ;;  %v596_v51 = vunpack.c.l.s4 (!%p244_p9), %v854_v50  ;;  %s712_s24 = sshll.u32 (!%p244_p9), %s920_s6, 5  ;;  %vm612_vm6 = vcmp.lt.s32.totalorder (!%p244_p9), %v508_v48, 256  ;;  %s855_s6 = smov (!%p244_p9), [#allocation3]  }
  0x15   : > { %v501_v47 = vld [vmem:[%s1045_s5] sm:$0x1] (!%p244_p9)  ;;  %v510_v52 = vsub.s32 (!%p244_p9), 0, %v509_v49  ;;  %s791_s17 = sshll.u32 (!%p244_p9), %s855_s6, 4  ;;  %s792_s17 = int_to_ptr.vmem [resolvable:$false] %s791_s17 }
  0x16   : > { %294 = vperm.xlu0 (!%p244_p9), %768, %v286_v4   ;;  %v597_v54 = vunpack.c.0.s8 (!%p244_p9), %v596_v51  ;;  %s793_s18 = scalar_lea.vmem (!%p244_p9), %s792_s17, 64 }
  0x18   : > { %s1057_s14 = smov (!%p276_p10, %s694_s14), 3  ;;  %403 = vperm.xlu1 %769, %v395_v11   ;;  %v600_v60 = vsub.s32 %v597_v54, %v509_v49 }
  0x19   : > { %s695_s19 = sshll.u32 %s1057_s14, 2  ;;  %s998_s14 = scalar_lea.hbm %s1047_s7, %s712_s24 }
  0x1a   : > { %s279_s22 = scalar_lea.vmem %s1040_s0, %s695_s19  ;;  %505 = vperm.xlu0 %768, %v502_v6  }
  0x1b   : > { %v282_v5 = vld [vmem:[%s279_s22] sm:$0xff]  ;;  %s272_s22 = sand.u32 1, %s841_s27  }
  0x1c   : > { %v298_v7 = vcombine.high %v282_v5, %v282_v5  ;;  %s693_s23 = sshll.u32 %s272_s22, 1  ;;  %s616_s15 = scalar_lea.sflag [#allocation4], %s272_s22 }
  0x1d   : > { %s274_s25 = scalar_lea.vmem [#allocation3], %s693_s23 }
  0x1e   : > { %696 = vmatprep.subr.msk.mxu0 %vm306_vm0, %v298_v7  ;;  %s630_s30 = sshll.u32 %s274_s25, 4  ;;  %s1000_s30 = int_to_ptr.vmem [resolvable:$true] %s630_s30 }
  0x1f   : > { %697 = vmatpush1.msk.msra.mxu0 %vm306_vm0, %v282_v5  ;;  %s787_s16 = scalar_lea.vmem %s1000_s30, 32  ;;  %p794_p0 = scmp.lt.s32.totalorder %s1000_s30, %s792_s17 }
  0x20   : > { %698 = vmatmul.mubr.msk.f32.vlgmr.msra.gmra.mrb[0].mxu0 %vm299_vm1, %v283_v8  ;;  %p788_p11 = scmp.ne.s32.totalorder %s1000_s30, %s787_s16  ;;  %p795_p1 = scmp.lt.s32.totalorder %s793_s18, %s787_s16 }
  0x21   : > { %381 = vmatprep.mubr.f32.mxu0 %v851_v1 }
  0x22   : > { %p789_p12 = pnand %p788_p11, %p937_p5  ;;  %p796_p2 = por %p795_p1, %p794_p0 }
  0x24   : > { %699 = vmatmul.mubr.msk.f32.gmra.mrb[2].mxu0 %vm299_vm1, %v284_v9  ;;  %p790_p13 = pneg %p789_p12 }
  0x25   : > { %585 = vmatprep.mubr.f32.mxu0 %v851_v1 }
  0x26   : > { %p797_p3 = pnand %p796_p2, %p790_p13 }
  0x91   : > { %v290_v12 = vpop.permute.xlu0 %289 }
  0x93   : > { %v399_v31 = vpop.permute.xlu1 %398 }
  0x95   : > { %v295_v17 = vpop.permute.xlu0 %294 }
  0x97   : > { %v404_v36 = vpop.permute.xlu1 %403 }
  0x99   : > { %v506_v53 = vpop.permute.xlu0 %505 }
  0x9a   : > { %v511_v55 = vrot.slane %v506_v53, %v510_v52 }
  0xf3   : > { %v377_v13 = vpop.f32.mrb[0].mxu0 }
  0xf4   : > { %v378_v14 = vadd.f32 %v377_v13, %v290_v12  ;;  %v379_v15 = vpop.f32.mrb[1].mxu0 }
  0xf5   : > { %v380_v16 = vadd.f32 %v379_v15, %v290_v12 }
  0xf6   : > { %771 = vtanh.f32 %v378_v14 }
  0xf7   : > { %v383_v18 = vpop.f32.mrb[2].mxu0  ;;  %773 = vtanh.f32 %v380_v16 }
  0xf8   : > { %v384_v19 = vadd.f32 %v383_v18, %v295_v17  ;;  %v385_v20 = vpop.f32.mrb[3].mxu0 }
  0xf9   : > { %v386_v21 = vadd.f32 %v385_v20, %v295_v17 }
  0xfa   : > { %775 = vtanh.f32 %v384_v19 }
  0xfb   : > { %777 = vtanh.f32 %v386_v21 }
 0x100   : > { %v772_v22 = vpop.eup %771 }
 0x101   : > { %v774_v23 = vpop.eup %773 }
 0x104   : > { %v776_v24 = vpop.eup %775 }
 0x105   : > { %v778_v25 = vpop.eup %777  ;;  %v716_v27 = vpack.c.bf16 %v776_v24, %v772_v22 }
 0x106   : > { %v713_v28 = vpack.c.bf16 %v778_v25, %v774_v23 }
 0x108   : > { %715 = vmatprep.subr.msk.bf16.mxu1 %vm969_vm4, %v713_v28 }
 0x109   : > { %718 = vmatpush1.bf16.msk.msra.mxu1 %vm969_vm4, %v716_v27 }
 0x10c   : > { %702 = vmatmul.mubr.msk.f32.vlgmr.msra.gmra.mrb[0].mxu1 %vm406_vm5, %v392_v29 }
 0x10d   : > { %490 = vmatprep.mubr.f32.mxu1 %v851_v1 }
 0x110   : > { %703 = vmatmul.mubr.msk.f32.gmra.mrb[2].mxu1 %vm406_vm5, %v393_v30 }
 0x1df   : > { %v486_v32 = vpop.f32.mrb[0].mxu1 }
 0x1e0   : > { %v487_v33 = vadd.f32 %v486_v32, %v399_v31  ;;  %v488_v34 = vpop.f32.mrb[1].mxu1 }
 0x1e1   : > { %v489_v35 = vadd.f32 %v488_v34, %v399_v31 }
 0x1e2   : > { %779 = vtanh.f32 %v487_v33 }
 0x1e3   : > { %v492_v37 = vpop.f32.mrb[2].mxu1  ;;  %781 = vtanh.f32 %v489_v35 }
 0x1e4   : > { %v493_v38 = vadd.f32 %v492_v37, %v404_v36  ;;  %v494_v39 = vpop.f32.mrb[3].mxu1 }
 0x1e5   : > { %v495_v40 = vadd.f32 %v494_v39, %v404_v36 }
 0x1e6   : > { %783 = vtanh.f32 %v493_v38 }
 0x1e7   : > { %785 = vtanh.f32 %v495_v40 }
 0x1ec   : > { %v780_v41 = vpop.eup %779 }
 0x1ed   : > { %v782_v42 = vpop.eup %781 }
 0x1f0   : > { %v784_v43 = vpop.eup %783 }
 0x1f1   : > { %v786_v44 = vpop.eup %785  ;;  %v722_v45 = vpack.c.bf16 %v784_v43, %v780_v41 }
 0x1f2   : > { %v719_v46 = vpack.c.bf16 %v786_v44, %v782_v42 }
 0x1f4   : > { %721 = vmatprep.subr.msk.bf16.mxu0 %vm969_vm4, %v719_v46 }
 0x1f5   : > { %724 = vmatpush1.bf16.msk.msra.mxu0 %vm969_vm4, %v722_v45 }
 0x1f8   : > { %706 = vmatmul.mubr.msk.f32.vlgmr.msra.gmra.mrb[4].mxu0 %vm406_vm5, %v501_v47 }
 0x2cb   : > { %v587_v56 = vpop.f32.mrb[4].mxu0 }
 0x2cc   : > { %v588_v57 = vadd.f32 %v587_v56, %v511_v55  ;;  %v589_v58 = vpop.f32.mrb[5].mxu0 }
 0x2cd   : > { %v590_v59 = vadd.f32 %v589_v58, %v511_v55 }
 0x2cf   : > { %v594_v61 = vcombine.low %v588_v57, %v590_v59 }
 0x2d1   : > { %v601_v62 = vrot.slane %v594_v61, %v600_v60 }
 0x2d3   : > { %v608_v63 = vrot.slane %v601_v62, %v600_v60 }
 0x2d5   : > { %614 = vst.msk [vmem:[%s274_s25] sm:$0x3] %vm612_vm6, %v608_v63 }
 0x2d6   : > { %800 = shalt.err (!%p797_p3)
}
 0x2d7   : > { %s801_s19 = scalar_lea.hbm %s998_s14, 32  ;;  %s805_s22 = scalar_lea.hbm %s1047_s7, 64 }
 0x2d8   : > { %p802_p4 = scmp.ne.s32.totalorder %s998_s14, %s801_s19  ;;  %p806_p9 = scmp.lt.u32.totalorder %s998_s14, %s1047_s7 }
 0x2d9   : > { %p807_p10 = scmp.lt.u32.totalorder %s805_s22, %s801_s19  ;;  %p809_p12 = scmp.lt.u32.totalorder %s801_s19, %s998_s14 }
 0x2da   : > { %p803_p7 = pnand %p802_p4, %p937_p5 }
 0x2db   : > { %p808_p11 = por %p807_p10, %p806_p9 }
 0x2dc   : > { %p804_p8 = pneg %p803_p7 }
 0x2dd   : > { %p810_p13 = por %p809_p12, %p808_p11 }
 0x2df   : > { %p811_p0 = pnand %p810_p13, %p804_p8 }
 0x2e1   : > { %814 = shalt.err (!%p811_p0)
}
 0x2e2   : > { %725 = dma.vmem_to_hbm [thread:$0]  (%p937_p5), %s1000_s30, 32, %s998_s14, %s616_s15  }
 0x2e3 PF: > { %p731_p1 = scmp.ge.s32.totalorder %s849_s29, 2  ;;  %s642_s25 = sand.u32 1, %s837_s26  }
 0x2e4   : > { %s643_s9 = scalar_lea.sflag [#allocation4], %s642_s25 }
 0x2e5   : > { %p728_p2 = pnand %p731_p1, %p941_p6 }
 0x2e7   : > { %832 = dma.done.wait (!%p728_p2), %s643_s9, 32  }
 0x2e8   : > { %834 = vsyncadd (!%p728_p2), %s643_s9, 4294967264  ;;  %p19_p3 = scmp.ge.s32.totalorder %s924_s8, 4   ;;  %s1052_s26 = smov %s841_s27 }
 0x2e9   : > { %s1053_s27 = smov %s845_s28  ;;  %s1054_s28 = smov %s935_s11 }
 0x2ea   : > { %s1055_s29 = smov %s924_s8  ;;  %21 = sbr.rel (!%p19_p3) target bundleno = 6 (0x6), region = 83 }
 0x2f1   :  { %648 = vsyncpa [#allocation4], 1 }
 0x2f2   :  { %650 = vsyncpa [#allocation4 + $0x1], 1 }

</bundles_post_ra>
